<compile_context>
chip_gen: v5e
topology: v5e:2x2
jax: 0.10.0
libtpu: 0.0.40
codegen_flags: <defaults>
</compile_context>

<pallas_src>
import jax
import jax.numpy as jnp
from jax.experimental import pallas as pl
from jax.experimental.pallas import tpu as pltpu


# VMEM sizing: budgets are per-kernel working-set estimates (Pallas
# double-buffers every block).  The scoped limit stays below v7x's 64 MiB
# physical VMEM while lifting v5e's 16 MiB default.
_VMEM_LIMIT_BYTES = 48 * 1024 * 1024
_MATMUL_VMEM_BUDGET = 20 * 1024 * 1024
_ATTN_VMEM_BUDGET = 24 * 1024 * 1024


def _round_up(x, m):
    return ((x + m - 1) // m) * m


def _pick_tile(n, target, mult):
    """Largest divisor of n that is <= target and a multiple of `mult`
    (falls back to the full dim, which is always a legal block extent)."""
    target = max(1, min(n, target))
    for t in range(target, 0, -1):
        if n % t == 0 and (t % mult == 0 or t == n):
            return t
    return n


# ----------------------------- linear kernels ------------------------------ #

def _make_linear_kernel(n_w, has_bias):
    def kernel(*refs):
        x_ref = refs[0]
        w_refs = refs[1:1 + n_w]
        off = 1 + n_w
        if has_bias:
            b_refs = refs[off:off + n_w]
            o_refs = refs[off + n_w:]
        else:
            b_refs = (None,) * n_w
            o_refs = refs[off:]
        x = x_ref[...]
        for w_ref, b_ref, o_ref in zip(w_refs, b_refs, o_refs):
            acc = jnp.dot(x, w_ref[...], preferred_element_type=jnp.float32)
            if b_ref is not None:
                acc = acc + b_ref[...].astype(jnp.float32)
            o_ref[...] = acc.astype(o_ref.dtype)
    return kernel


def pallas_linear(x2d, weights, biases=None, *, tm_target=512, tn_target=512):
    """outs[i] = x2d @ weights[i] (+ biases[i]); all weights share (K, N).

    Fusing several weights means x is streamed through the MXU / from HBM once
    (used for the Q/K/V and K/V projections)."""
    m, k = x2d.shape
    n = weights[0].shape[1]
    n_w = len(weights)
    has_bias = biases is not None
    itemsize = x2d.dtype.itemsize

    tm = _pick_tile(m, tm_target, 8)
    tn = _pick_tile(n, tn_target, 128)

    def footprint(tm_, tn_):
        # x + n_w weights + n_w outputs, double-buffered by the pipeline.
        return 2 * (tm_ * k + n_w * k * tn_ + n_w * tm_ * tn_) * itemsize

    while footprint(tm, tn) > _MATMUL_VMEM_BUDGET:
        if tn > 128 and n_w * k * tn >= tm * k:
            new = _pick_tile(n, max(128, tn // 2), 128)
            if new < tn:
                tn = new
                continue
        if tm > 8:
            new = _pick_tile(m, max(8, tm // 2), 8)
            if new < tm:
                tm = new
                continue
        if tn > 128:
            new = _pick_tile(n, max(128, tn // 2), 128)
            if new < tn:
                tn = new
                continue
        break

    n_rows, n_cols = m // tm, n // tn
    # Loop-order selection by re-read traffic: rows-outer re-reads the weights
    # n_rows times; cols-outer re-reads x n_cols times.  Keep the heavier
    # stream resident (for the big projections that is the weights).
    rows_outer = (n_rows - 1) * n_w * n <= (n_cols - 1) * m
    if rows_outer:
        grid = (n_rows, n_cols)
        x_map = lambda i, j: (i, 0)
        w_map = lambda i, j: (0, j)
        o_map = lambda i, j: (i, j)
    else:
        grid = (n_cols, n_rows)
        x_map = lambda j, i: (i, 0)
        w_map = lambda j, i: (0, j)
        o_map = lambda j, i: (i, j)

    in_specs = [pl.BlockSpec((tm, k), x_map)]
    in_specs += [pl.BlockSpec((k, tn), w_map) for _ in range(n_w)]
    args = [x2d] + list(weights)
    if has_bias:
        in_specs += [pl.BlockSpec((1, tn), w_map) for _ in range(n_w)]
        args += [b.reshape(1, n) for b in biases]

    out_shape = tuple(jax.ShapeDtypeStruct((m, n), x2d.dtype) for _ in range(n_w))
    out_specs = tuple(pl.BlockSpec((tm, tn), o_map) for _ in range(n_w))

    # TODO(synk): on v5e, pl.Buffered(3) on the streamed operand can hide
    # exposed DMA if xprof shows it; left at the default double buffering.
    return pl.pallas_call(
        _make_linear_kernel(n_w, has_bias),
        out_shape=out_shape,
        grid_spec=pltpu.PrefetchScalarGridSpec(
            num_scalar_prefetch=0,
            grid=grid,
            in_specs=in_specs,
            out_specs=out_specs,
        ),
        compiler_params=pltpu.CompilerParams(
            dimension_semantics=("parallel", "parallel"),
            vmem_limit_bytes=_VMEM_LIMIT_BYTES),
        cost_estimate=pl.CostEstimate(
            flops=2 * m * k * n * n_w,
            transcendentals=0,
            bytes_accessed=(m * k + n_w * k * n + n_w * m * n) * itemsize),
    )(*args)


# --------------------------- flash attention kernel ------------------------ #

def _make_flash_attn_kernel(heads, dim_head, block_kv, kv_len, needs_mask,
                            exp_dtype):
    def kernel(q_ref, k_ref, v_ref, o_ref, qt_scr, m_scr, l_scr, acc_scr):
        kv_idx = pl.program_id(2)

        @pl.when(kv_idx == 0)
        def _init():
            # Head split done once per q tile, in VMEM (no XLA transpose and
            # no HBM round trip).  Softmax scale is pre-folded into Wq.
            q = q_ref[0]                                       # (tq, heads*dh)
            for h in range(heads):
                qt_scr[h] = q[:, h * dim_head:(h + 1) * dim_head]
            m_scr[...] = jnp.full(m_scr.shape, -jnp.inf, m_scr.dtype)
            l_scr[...] = jnp.zeros(l_scr.shape, l_scr.dtype)
            acc_scr[...] = jnp.zeros(acc_scr.shape, acc_scr.dtype)

        k = k_ref[0]                                           # (tk, heads*dh)
        v = v_ref[0]
        kh = jnp.stack(
            [k[:, h * dim_head:(h + 1) * dim_head] for h in range(heads)], axis=0)
        vh = jnp.stack(
            [v[:, h * dim_head:(h + 1) * dim_head] for h in range(heads)], axis=0)
        qh = qt_scr[...]                                       # (heads, tq, dh)

        # QK^T contracted over dh, batched over heads; fp32 accumulation on the
        # MXU (the module's ATTN_PRECISION='fp32' path).
        s = jnp.einsum("hqd,hkd->hqk", qh, kh,
                       preferred_element_type=jnp.float32)
        if needs_mask:
            # Padded KV columns (KV length rounded up to 128) -> -inf scores.
            col = jax.lax.broadcasted_iota(jnp.int32, s.shape, 2) + kv_idx * block_kv
            s = jnp.where(col < kv_len, s, -jnp.inf)

        m_prev = m_scr[...]
        m_new = jnp.maximum(m_prev, s.max(axis=-1, keepdims=True))
        alpha = jnp.exp(m_prev - m_new)
        # exp at bf16 when the deployment dtype is bf16 (kernel is EUP-bound on
        # v6e/v7x); exact fp32 otherwise.
        p = jnp.exp((s - m_new).astype(exp_dtype))
        l_scr[...] = alpha * l_scr[...] + jnp.sum(
            p.astype(jnp.float32), axis=-1, keepdims=True)
        acc_scr[...] = alpha * acc_scr[...] + jnp.einsum(
            "hqk,hkd->hqd", p.astype(vh.dtype), vh,
            preferred_element_type=jnp.float32)
        m_scr[...] = m_new

        @pl.when(kv_idx == pl.num_programs(2) - 1)
        def _finalize():
            l = l_scr[...]
            inv_l = pl.reciprocal(l, approx=True)              # EUP slot
            inv_l = inv_l * (2.0 - l * inv_l)                  # one Newton step
            out = acc_scr[...] * inv_l                          # (heads, tq, dh)
            # Head merge in VMEM -> lane-dense (tq, heads*dh) store.
            o_ref[0] = jnp.concatenate(
                [out[h] for h in range(heads)], axis=-1).astype(o_ref.dtype)

    return kernel


def pallas_flash_attention(q, k, v, *, heads, dim_head,
                           tq_target=512, tk_target=512):
    """q: (b, n, heads*dim_head), k/v: (b, m, heads*dim_head), token-major.

    The softmax scale must already be folded into q (done via Wq at parameter
    prep).  Returns (b, n, heads*dim_head) in the same token-major layout, so
    no XLA head rearranges are needed around the kernel."""
    b, n, inner = q.shape
    m = k.shape[1]
    assert inner == heads * dim_head
    dtype = q.dtype
    itemsize = dtype.itemsize

    # Pad KV length to a lane-dense multiple of 128 (e.g. CLIP's 77 tokens);
    # padded columns are masked to -inf inside the kernel.  Pad queries to a
    # sublane multiple of 8 if needed (padded rows are sliced off afterwards).
    m_pad = _round_up(m, 128)
    needs_mask = m_pad != m
    if needs_mask:
        pad = ((0, 0), (0, m_pad - m), (0, 0))
        k = jnp.pad(k, pad)
        v = jnp.pad(v, pad)
    n_pad = _round_up(n, 8)
    if n_pad != n:
        q = jnp.pad(q, ((0, 0), (0, n_pad - n), (0, 0)))

    tq = _pick_tile(n_pad, tq_target, 8)
    tk = _pick_tile(m_pad, tk_target, 128)

    def footprint(tq_, tk_):
        blocks = 2 * (2 * tq_ * inner + 2 * tk_ * inner) * itemsize  # q,o,k,v x2
        scratch = (tq_ * inner * itemsize            # split q
                   + heads * tq_ * dim_head * 4      # fp32 accumulator
                   + 2 * heads * tq_ * 128 * 4)      # m / l (lane-padded)
        interm = 2 * heads * tq_ * tk_ * 4           # live s and p values
        return blocks + scratch + interm

    while footprint(tq, tk) > _ATTN_VMEM_BUDGET:
        if tk > 128 and tk >= tq:
            new = _pick_tile(m_pad, max(128, tk // 2), 128)
            if new < tk:
                tk = new
                continue
        if tq > 8:
            new = _pick_tile(n_pad, max(8, tq // 2), 8)
            if new < tq:
                tq = new
                continue
        if tk > 128:
            new = _pick_tile(m_pad, max(128, tk // 2), 128)
            if new < tk:
                tk = new
                continue
        break

    # (batch, q-tiles) are "parallel" (>= 2 steps whenever batch >= 2, keeping
    # both v7x TensorCores busy); the kv axis is the innermost reduction.
    grid = (b, n_pad // tq, m_pad // tk)
    exp_dtype = jnp.bfloat16 if dtype == jnp.bfloat16 else jnp.float32

    out = pl.pallas_call(
        _make_flash_attn_kernel(heads, dim_head, tk, m, needs_mask, exp_dtype),
        out_shape=jax.ShapeDtypeStruct((b, n_pad, inner), dtype),
        grid_spec=pltpu.PrefetchScalarGridSpec(
            num_scalar_prefetch=0,
            grid=grid,
            in_specs=[
                pl.BlockSpec((1, tq, inner), lambda bi, qi, ki: (bi, qi, 0)),
                pl.BlockSpec((1, tk, inner), lambda bi, qi, ki: (bi, ki, 0)),
                pl.BlockSpec((1, tk, inner), lambda bi, qi, ki: (bi, ki, 0)),
            ],
            out_specs=pl.BlockSpec((1, tq, inner),
                                   lambda bi, qi, ki: (bi, qi, 0)),
            scratch_shapes=[
                pltpu.VMEM((heads, tq, dim_head), dtype),        # split q
                pltpu.VMEM((heads, tq, 1), jnp.float32),         # running max
                pltpu.VMEM((heads, tq, 1), jnp.float32),         # running denom
                pltpu.VMEM((heads, tq, dim_head), jnp.float32),  # accumulator
            ],
        ),
        compiler_params=pltpu.CompilerParams(
            dimension_semantics=("parallel", "parallel", "arbitrary"),
            vmem_limit_bytes=_VMEM_LIMIT_BYTES),
        cost_estimate=pl.CostEstimate(
            flops=4 * b * heads * n_pad * m_pad * dim_head,
            transcendentals=b * heads * n_pad * m_pad,
            bytes_accessed=(2 * b * n_pad * inner + 2 * b * m_pad * inner) * itemsize),
    )(q, k, v)

    return out[:, :n, :] if n_pad != n else out


# --------------------------- module-level wrappers -------------------------- #

def prepare_cross_attention_params(params, *, dim_head):
    """One-time parameter prep (not per forward call): fold the softmax scale
    into Wq so the kernels never multiply by `scale` at runtime."""
    scale = dim_head ** (-0.5)
    out = dict(params)
    out["wq"] = params["wq"] * jnp.asarray(scale, params["wq"].dtype)
    return out


def cross_attention_forward(x, prepared, *, heads, dim_head, context=None):
    """Pallas CrossAttention.forward (hint=None, mask/mask1/mask2=None,
    use_attention_tv_loss=False, dropout=0 -> identity).

    `prepared` must come from prepare_cross_attention_params.  Running the
    whole thing in bf16 (x / context / weights) keeps fp32 accumulation and is
    the recommended deployment dtype on v6e/v7x."""
    b, n, dq = x.shape
    inner = heads * dim_head
    is_self_attn = context is None
    ctx = x if is_self_attn else context
    m, dc = ctx.shape[1], ctx.shape[2]

    if is_self_attn:
        # Fused Q/K/V projection: x is streamed from HBM / through the MXU once
        # and each weight stays VMEM-resident (no concatenated-weight copy).
        q, k, v = pallas_linear(
            x.reshape(b * n, dq),
            [prepared["wq"], prepared["wk"], prepared["wv"]])
        kv_len = n
    else:
        (q,) = pallas_linear(x.reshape(b * n, dq), [prepared["wq"]])
        k, v = pallas_linear(ctx.reshape(b * m, dc),
                             [prepared["wk"], prepared["wv"]])
        kv_len = m

    # Attention consumes / produces the token-major (b, s, heads*dim_head)
    # layout directly; the head split/merge happens inside the kernel in VMEM,
    # so there are no XLA rearranges (and no extra HBM round trips) here.
    out = pallas_flash_attention(q.reshape(b, n, inner),
                                 k.reshape(b, kv_len, inner),
                                 v.reshape(b, kv_len, inner),
                                 heads=heads, dim_head=dim_head)

    # to_out = Linear(inner, query_dim) + Dropout(0.0) (identity at eval).
    (y,) = pallas_linear(out.reshape(b * n, inner), [prepared["wo"]],
                         [prepared["bo"]])
    return y.reshape(b, n, dq)

    # TODO(synk): mask / mask1 / mask2 branches (F.interpolate-based attention
    # masking), the hint warning path and use_attention_tv_loss are not part of
    # the default forward and are omitted.


# ------------------------------- references -------------------------------- #

def cross_attention_reference(x, params, *, heads, dim_head, context=None):
    b, n, dq = x.shape
    ctx = x if context is None else context
    m = ctx.shape[1]
    inner = heads * dim_head
    scale = dim_head ** (-0.5)
    q = x @ params["wq"]
    k = ctx @ params["wk"]
    v = ctx @ params["wv"]
    qh = q.reshape(b, n, heads, dim_head).transpose(0, 2, 1, 3)
    kh = k.reshape(b, m, heads, dim_head).transpose(0, 2, 1, 3)
    vh = v.reshape(b, m, heads, dim_head).transpose(0, 2, 1, 3)
    sim = jnp.einsum("bhid,bhjd->bhij", qh.astype(jnp.float32),
                     kh.astype(jnp.float32)) * scale
    attn = jax.nn.softmax(sim, axis=-1)
    out = jnp.einsum("bhij,bhjd->bhid", attn, vh.astype(jnp.float32))
    out = out.transpose(0, 2, 1, 3).reshape(b, n, inner)
    return out @ params["wo"] + params["bo"]


def attention_reference(q, k, v, *, heads, dim_head):
    b, n, inner = q.shape
    m = k.shape[1]
    qh = q.reshape(b, n, heads, dim_head).transpose(0, 2, 1, 3)
    kh = k.reshape(b, m, heads, dim_head).transpose(0, 2, 1, 3)
    vh = v.reshape(b, m, heads, dim_head).transpose(0, 2, 1, 3)
    s = jnp.einsum("bhid,bhjd->bhij", qh.astype(jnp.float32),
                   kh.astype(jnp.float32))
    a = jax.nn.softmax(s, axis=-1)
    o = jnp.einsum("bhij,bhjd->bhid", a, vh.astype(jnp.float32))
    return o.transpose(0, 2, 1, 3).reshape(b, n, inner).astype(q.dtype)


# ----------------------------------- main ----------------------------------- #

if __name__ == "__main__":
    # 1) Self-attention (context=None), the module's default path, small shapes.
    B, N, QUERY_DIM = 2, 16, 32
    HEADS, DIM_HEAD = 4, 16
    INNER = HEADS * DIM_HEAD

    key = jax.random.PRNGKey(0)
    kx, kq, kk, kv, ko, kb, kc, kk2, kv2, kaq, kak, kav = jax.random.split(key, 12)

    x = jax.random.normal(kx, (B, N, QUERY_DIM), dtype=jnp.float32)
    params = {
        "wq": jax.random.normal(kq, (QUERY_DIM, INNER), jnp.float32) * 0.05,
        "wk": jax.random.normal(kk, (QUERY_DIM, INNER), jnp.float32) * 0.05,
        "wv": jax.random.normal(kv, (QUERY_DIM, INNER), jnp.float32) * 0.05,
        "wo": jax.random.normal(ko, (INNER, QUERY_DIM), jnp.float32) * 0.05,
        "bo": jax.random.normal(kb, (QUERY_DIM,), jnp.float32) * 0.05,
    }
    prepared = prepare_cross_attention_params(params, dim_head=DIM_HEAD)

    y = cross_attention_forward(x, prepared, heads=HEADS, dim_head=DIM_HEAD)
    y = jax.block_until_ready(y)
    y_ref = cross_attention_reference(x, params, heads=HEADS, dim_head=DIM_HEAD)
    assert y.shape == (B, N, QUERY_DIM), y.shape
    assert jnp.allclose(y, y_ref, atol=1e-4, rtol=1e-4), \
        float(jnp.max(jnp.abs(y - y_ref)))

    # 2) Cross-attention with a context of different length / width
    #    (exercises the KV-pad + -inf mask path, like CLIP's 77 tokens).
    M_CTX, CONTEXT_DIM = 24, 48
    ctx = jax.random.normal(kc, (B, M_CTX, CONTEXT_DIM), dtype=jnp.float32)
    params_x = dict(params)
    params_x["wk"] = jax.random.normal(kk2, (CONTEXT_DIM, INNER), jnp.float32) * 0.05
    params_x["wv"] = jax.random.normal(kv2, (CONTEXT_DIM, INNER), jnp.float32) * 0.05
    prepared_x = prepare_cross_attention_params(params_x, dim_head=DIM_HEAD)
    y2 = cross_attention_forward(x, prepared_x, heads=HEADS, dim_head=DIM_HEAD,
                                 context=ctx)
    y2 = jax.block_until_ready(y2)
    y2_ref = cross_attention_reference(x, params_x, heads=HEADS,
                                       dim_head=DIM_HEAD, context=ctx)
    assert jnp.allclose(y2, y2_ref, atol=1e-4, rtol=1e-4), \
        float(jnp.max(jnp.abs(y2 - y2_ref)))

    # 3) Attention-kernel check with multiple q and kv grid steps and an
    #    unaligned KV length (multi-step online softmax + padded-column mask).
    AB, AN, AM, AH, AD = 2, 256, 200, 4, 32
    AINNER = AH * AD
    qa = jax.random.normal(kaq, (AB, AN, AINNER), jnp.float32) * 0.3
    ka = jax.random.normal(kak, (AB, AM, AINNER), jnp.float32) * 0.3
    va = jax.random.normal(kav, (AB, AM, AINNER), jnp.float32)
    oa = pallas_flash_attention(qa, ka, va, heads=AH, dim_head=AD,
                                tq_target=64, tk_target=128)
    oa = jax.block_until_ready(oa)
    oa_ref = attention_reference(qa, ka, va, heads=AH, dim_head=AD)
    assert jnp.allclose(oa, oa_ref, atol=2e-4, rtol=2e-4), \
        float(jnp.max(jnp.abs(oa - oa_ref)))

    print("KERNEL_OK")
</pallas_src>

<mosaic_0001>
module attributes {stable_mosaic.version = 11 : i64} {
  func.func @kernel(%arg0: i32, %arg1: i32, %arg2: memref<32x32xf32, #tpu.memory_space<vmem>>, %arg3: memref<32x64xf32, #tpu.memory_space<vmem>>, %arg4: memref<32x64xf32, #tpu.memory_space<vmem>>, %arg5: memref<32x64xf32, #tpu.memory_space<vmem>>, %arg6: memref<32x64xf32, #tpu.memory_space<vmem>>, %arg7: memref<32x64xf32, #tpu.memory_space<vmem>>, %arg8: memref<32x64xf32, #tpu.memory_space<vmem>>) attributes {dimension_semantics = [#tpu.dimension_semantics<parallel>, #tpu.dimension_semantics<parallel>], iteration_bounds = array<i64: 1, 1>, scalar_prefetch = 0 : i64, scratch_operands = 0 : i64, tpu.core_type = #tpu.core_type<tc>, window_params = [{transform_indices = @transform_0, window_bounds = array<i64: 32, 32>}, {transform_indices = @transform_1, window_bounds = array<i64: 32, 64>}, {transform_indices = @transform_2, window_bounds = array<i64: 32, 64>}, {transform_indices = @transform_3, window_bounds = array<i64: 32, 64>}, {transform_indices = @transform_4, window_bounds = array<i64: 32, 64>}, {transform_indices = @transform_5, window_bounds = array<i64: 32, 64>}, {transform_indices = @transform_6, window_bounds = array<i64: 32, 64>}]} {
    %c0 = arith.constant 0 : index
    %c0_0 = arith.constant 0 : index
    %0 = vector.load %arg2[%c0, %c0_0] : memref<32x32xf32, #tpu.memory_space<vmem>>, vector<32x32xf32>
    %c0_1 = arith.constant 0 : index
    %c0_2 = arith.constant 0 : index
    %1 = vector.load %arg3[%c0_1, %c0_2] : memref<32x64xf32, #tpu.memory_space<vmem>>, vector<32x64xf32>
    %cst = arith.constant dense<0.000000e+00> : vector<32x64xf32>
    %2 = tpu.matmul %0, %1, %cst {dimension_numbers = #tpu.dot_dimension_numbers<[1], [0], [0], [1], [0, 0, 1, 1], [], []>} : vector<32x32xf32>, vector<32x64xf32>, vector<32x64xf32> -> vector<32x64xf32>
    %c0_3 = arith.constant 0 : index
    %c0_4 = arith.constant 0 : index
    %3 = vector.load %arg6[%c0_3, %c0_4] : memref<32x64xf32, #tpu.memory_space<vmem>>, vector<32x64xf32>
    tpu.vector_store %arg6[%c0_3, %c0_4], %2 {strides = array<i32>} : memref<32x64xf32, #tpu.memory_space<vmem>>, vector<32x64xf32>,
    %c0_5 = arith.constant 0 : index
    %c0_6 = arith.constant 0 : index
    %4 = vector.load %arg4[%c0_5, %c0_6] : memref<32x64xf32, #tpu.memory_space<vmem>>, vector<32x64xf32>
    %cst_7 = arith.constant dense<0.000000e+00> : vector<32x64xf32>
    %5 = tpu.matmul %0, %4, %cst_7 {dimension_numbers = #tpu.dot_dimension_numbers<[1], [0], [0], [1], [0, 0, 1, 1], [], []>} : vector<32x32xf32>, vector<32x64xf32>, vector<32x64xf32> -> vector<32x64xf32>
    %c0_8 = arith.constant 0 : index
    %c0_9 = arith.constant 0 : index
    %6 = vector.load %arg7[%c0_8, %c0_9] : memref<32x64xf32, #tpu.memory_space<vmem>>, vector<32x64xf32>
    tpu.vector_store %arg7[%c0_8, %c0_9], %5 {strides = array<i32>} : memref<32x64xf32, #tpu.memory_space<vmem>>, vector<32x64xf32>,
    %c0_10 = arith.constant 0 : index
    %c0_11 = arith.constant 0 : index
    %7 = vector.load %arg5[%c0_10, %c0_11] : memref<32x64xf32, #tpu.memory_space<vmem>>, vector<32x64xf32>
    %cst_12 = arith.constant dense<0.000000e+00> : vector<32x64xf32>
    %8 = tpu.matmul %0, %7, %cst_12 {dimension_numbers = #tpu.dot_dimension_numbers<[1], [0], [0], [1], [0, 0, 1, 1], [], []>} : vector<32x32xf32>, vector<32x64xf32>, vector<32x64xf32> -> vector<32x64xf32>
    %c0_13 = arith.constant 0 : index
    %c0_14 = arith.constant 0 : index
    %9 = vector.load %arg8[%c0_13, %c0_14] : memref<32x64xf32, #tpu.memory_space<vmem>>, vector<32x64xf32>
    tpu.vector_store %arg8[%c0_13, %c0_14], %8 {strides = array<i32>} : memref<32x64xf32, #tpu.memory_space<vmem>>, vector<32x64xf32>,
    return
  }
  func.func @transform_0(%arg0: i32, %arg1: i32) -> (i32, i32) {
    %c0_i32 = arith.constant 0 : i32
    %c0_i32_0 = arith.constant 0 : i32
    return %arg0, %c0_i32 : i32, i32
  }
  func.func @transform_1(%arg0: i32, %arg1: i32) -> (i32, i32) {
    %c0_i32 = arith.constant 0 : i32
    %c0_i32_0 = arith.constant 0 : i32
    return %c0_i32, %arg1 : i32, i32
  }
  func.func @transform_2(%arg0: i32, %arg1: i32) -> (i32, i32) {
    %c0_i32 = arith.constant 0 : i32
    %c0_i32_0 = arith.constant 0 : i32
    return %c0_i32, %arg1 : i32, i32
  }
  func.func @transform_3(%arg0: i32, %arg1: i32) -> (i32, i32) {
    %c0_i32 = arith.constant 0 : i32
    %c0_i32_0 = arith.constant 0 : i32
    return %c0_i32, %arg1 : i32, i32
  }
  func.func @transform_4(%arg0: i32, %arg1: i32) -> (i32, i32) {
    %c0_i32 = arith.constant 0 : i32
    return %arg0, %arg1 : i32, i32
  }
  func.func @transform_5(%arg0: i32, %arg1: i32) -> (i32, i32) {
    %c0_i32 = arith.constant 0 : i32
    return %arg0, %arg1 : i32, i32
  }
  func.func @transform_6(%arg0: i32, %arg1: i32) -> (i32, i32) {
    %c0_i32 = arith.constant 0 : i32
    return %arg0, %arg1 : i32, i32
  }
}

</mosaic_0001>

<bundles_post_ra>
// kernel: tpu_custom_call.1
= control target key start
LH: loop header
LB: loop body
LE: loop exit
PB: predicated region body
PF: predicated region fallthrough
CT: control target
= control target key end

     0   :  { %12 = vsyncpa [#allocation3], 0  ;;  %s591_s0 = inlined_call_operand.hbm [shape: f32[32,32], index: 0, kind: input, shape index: {}]   ;;  %s592_s1 = inlined_call_operand.hbm [shape: f32[32,64], index: 1, kind: input, shape index: {}]   ;;  %s593_s2 = inlined_call_operand.hbm [shape: f32[32,64], index: 2, kind: input, shape index: {}]   ;;  %s594_s3 = inlined_call_operand.hbm [shape: f32[32,64], index: 3, kind: input, shape index: {}]   ;;  %s595_s4 = inlined_call_operand.hbm [shape: f32[32,64], index: 4, kind: output, shape index: {0}]   ;;  %s596_s5 = inlined_call_operand.hbm [shape: f32[32,64], index: 5, kind: output, shape index: {1}]   ;;  %s597_s6 = inlined_call_operand.hbm [shape: f32[32,64], index: 6, kind: output, shape index: {2}]  }
   0x1   :  { %13 = vsyncpa [#allocation6], 0 }
   0x2   :  { %14 = vsyncpa [#allocation9], 0 }
   0x3   :  { %15 = vsyncpa [#allocation4], 0 }
   0x4   :  { %16 = vsyncpa [#allocation12], 0  ;;  %s34_s23 = sshll.u32 %s592_s1, 4  ;;  %s481_s24 = smov [#allocation5]   ;;  %s35_s23 = int_to_ptr.hbm [resolvable:$true] %s34_s23 }
   0x5   :  { %s36_s25 = sshll.u32 %s481_s24, 4  ;;  %s21_s28 = sshll.u32 %s591_s0, 4  ;;  %s37_s25 = int_to_ptr.vmem [resolvable:$true] %s36_s25  ;;  %s22_s28 = int_to_ptr.hbm [resolvable:$true] %s21_s28 }
   0x6   :  { %s482_s29 = smov 128   ;;  %s483_s30 = smov 8  }
   0x7   :  { %42 = dma.hbm_to_vmem [thread:$0]  %s35_s23, 512, %s37_s25, [#allocation6], %s482_s29, %s482_s29, %s483_s30  }
   0x8   :  { %s484_s7 = smov [#allocation2]   ;;  %s47_s1 = sshll.u32 %s593_s2, 4  ;;  %s48_s1 = int_to_ptr.hbm [resolvable:$true] %s47_s1 }
   0x9   :  { %s23_s8 = sshll.u32 %s484_s7, 4  ;;  %s60_s12 = sshll.u32 %s594_s3, 4  ;;  %s24_s8 = int_to_ptr.vmem [resolvable:$true] %s23_s8  ;;  %s61_s12 = int_to_ptr.hbm [resolvable:$true] %s60_s12 }
   0xa   :  { %29 = dma.hbm_to_vmem [thread:$0]  %s22_s28, 512, %s24_s8, [#allocation3], %s482_s29, %s482_s29, %s483_s30  }
   0xb   :  { %s485_s13 = smov [#allocation7]   ;;  %s486_s15 = smov [#allocation8]  }
   0xc   :  { %s49_s14 = sshll.u32 %s485_s13, 4  ;;  %s62_s2 = sshll.u32 %s486_s15, 4  ;;  %s50_s14 = int_to_ptr.vmem [resolvable:$true] %s49_s14  ;;  %s63_s2 = int_to_ptr.vmem [resolvable:$true] %s62_s2 }
   0xd   :  { %55 = dma.hbm_to_vmem [thread:$0]  %s48_s1, 512, %s50_s14, [#allocation6], %s482_s29, %s482_s29, %s483_s30  }
   0xe   :  { %68 = dma.hbm_to_vmem [thread:$0]  %s61_s12, 512, %s63_s2, [#allocation9], %s482_s29, %s482_s29, %s483_s30  }
   0xf   :  { %471 = dma.done.wait [#allocation3], 512  }
  0x10   :  { %472 = vsyncadd [#allocation3], 4294966784 }
  0x11   :  { %473 = dma.done.wait [#allocation6], 1024  }
  0x12   :  { %474 = vsyncadd [#allocation6], 4294966272 }
  0x13   :  { %475 = dma.done.wait [#allocation9], 512  }
  0x14   :  { %476 = vsyncadd [#allocation9], 4294966784  ;;  %v92_v0 = vld [vmem:[#allocation5 + $0x18] sm:$0xff]  ;;  %v91_v2 = vld [vmem:[#allocation5 + $0x10] sm:$0xff]  ;;  %vm93_vm0 = vcmask 261120   ;;  %vm135_vm1 = vcmask 523264  }
  0x15   :  { %v180_v1 = vld [vmem:[#allocation8 + $0x18] sm:$0xff]  ;;  %282 = vmatpush.msra.mxu3 %v92_v0  ;;  %v179_v3 = vld [vmem:[#allocation8 + $0x10] sm:$0xff]  ;;  %v90_v4 = vld [vmem:[#allocation5 + $0x8] sm:$0xff]  ;;  %118 = vmatpush.msra.mxu0 %v92_v0  ;;  %s487_s3 = smov [#allocation11]   ;;  %s233_s19 = sshll.u32 %s596_s5, 4  ;;  %s234_s19 = int_to_ptr.hbm [resolvable:$true] %s233_s19 }
  0x16   :  { %290 = vmatpush.msra.mxu2 %v180_v1  ;;  %v178_v5 = vld [vmem:[#allocation8 + $0x8] sm:$0xff]  ;;  %v143_v6 = vld [vmem:[#allocation7 + $0x18] sm:$0xff]  ;;  %v142_v7 = vld [vmem:[#allocation7 + $0x10] sm:$0xff]  ;;  %s231_s16 = sshll.u32 %s487_s3, 4  ;;  %s488_s20 = smov [#allocation10]   ;;  %s232_s16 = int_to_ptr.vmem [resolvable:$true] %s231_s16 }
  0x17   :  { %283 = vmatpush.msra.mxu3 %v91_v2  ;;  %286 = vmatpush.msra.mxu1 %v143_v6  ;;  %v89_v8 = vld [vmem:[#allocation5] sm:$0xff]  ;;  %v86_v10 = vld [vmem:[#allocation2 + $0x8] sm:$0xff]  ;;  %v87_v14 = vld [vmem:[#allocation2 + $0x10] sm:$0xff]  ;;  %s218_s21 = sshll.u32 %s488_s20, 4  ;;  %s220_s24 = sshll.u32 %s595_s4, 4  ;;  %s219_s21 = int_to_ptr.vmem [resolvable:$true] %s218_s21  ;;  %s221_s24 = int_to_ptr.hbm [resolvable:$true] %s220_s24 }
  0x18   :  { %291 = vmatpush.msra.mxu2 %v179_v3  ;;  %v177_v9 = vld [vmem:[#allocation8] sm:$0xff]  ;;  %119 = vmatpush.msra.mxu0 %v91_v2  ;;  %v141_v11 = vld [vmem:[#allocation7 + $0x8] sm:$0xff]  ;;  %v88_v15 = vld [vmem:[#allocation2 + $0x18] sm:$0xff]  ;;  %s489_s25 = smov [#allocation13]   ;;  %s246_s7 = sshll.u32 %s597_s6, 4  ;;  %s247_s7 = int_to_ptr.hbm [resolvable:$true] %s246_s7 }
  0x19   :  { %284 = vmatpush.msra.mxu3 %v90_v4  ;;  %287 = vmatpush.msra.mxu1 %v142_v7  ;;  %v85_v12 = vld [vmem:[#allocation2] sm:$0xff]  ;;  %s244_s26 = sshll.u32 %s489_s25, 4  ;;  %s245_s26 = int_to_ptr.vmem [resolvable:$true] %s244_s26 }
  0x1a   :  { %292 = vmatpush.msra.mxu2 %v178_v5  ;;  %120 = vmatpush.msra.mxu0 %v90_v4  ;;  %v140_v13 = vld [vmem:[#allocation7] sm:$0xff] }
  0x1b   :  { %285 = vmatpush.msra.mxu3 %v89_v8  ;;  %288 = vmatpush.msra.mxu1 %v141_v11 }
  0x1c   :  { %293 = vmatpush.msra.mxu2 %v177_v9  ;;  %271 = vmatmul.msk.f32.vlgmr.msra.gmra.mxu3 %vm93_vm0, %v86_v10 }
  0x1d   :  { %279 = vmatmul.msk.f32.vlgmr.msra.gmra.mxu2 %vm93_vm0, %v86_v10  ;;  %121 = vmatpush.msra.mxu0 %v89_v8 }
  0x1e   :  { %270 = vmatmul.msk.f32.vlgmr.msra.gmra.mxu0 %vm93_vm0, %v85_v12  ;;  %289 = vmatpush.msra.mxu1 %v140_v13 }
  0x1f   :  { %156 = vmatpush.msrb.mxu0 %v143_v6  ;;  %275 = vmatmul.msk.f32.vlgmr.msra.gmra.mxu1 %vm93_vm0, %v86_v10 }
  0x21   :  { %157 = vmatpush.msrb.mxu0 %v142_v7 }
  0x23   :  { %158 = vmatpush.msrb.mxu0 %v141_v11 }
  0x24   :  { %272 = vmatmul.msk.f32.gmra.mxu3 %vm93_vm0, %v87_v14 }
  0x25   :  { %280 = vmatmul.msk.f32.gmra.mxu2 %vm93_vm0, %v87_v14  ;;  %159 = vmatpush.msrb.mxu0 %v140_v13 }
  0x26   :  { %274 = vmatmul.msk.f32.vlgmr.msrb.gmra.mxu0 %vm93_vm0, %v85_v12 }
  0x27   :  { %193 = vmatpush.msra.mxu0 %v180_v1  ;;  %276 = vmatmul.msk.f32.gmra.mxu1 %vm93_vm0, %v87_v14 }
  0x29   :  { %194 = vmatpush.msra.mxu0 %v179_v3 }
  0x2b   :  { %195 = vmatpush.msra.mxu0 %v178_v5 }
  0x2c   :  { %273 = vmatmul.msk.f32.gmra.mxu3 %vm93_vm0, %v88_v15 }
  0x2d   :  { %281 = vmatmul.msk.f32.gmra.mxu2 %vm93_vm0, %v88_v15  ;;  %196 = vmatpush.msra.mxu0 %v177_v9 }
  0x2e   :  { %278 = vmatmul.msk.f32.vlgmr.msra.gmra.mxu0 %vm93_vm0, %v85_v12 }
  0x2f   :  { %277 = vmatmul.msk.f32.gmra.mxu1 %vm93_vm0, %v88_v15 }
  0x9b   :  { %v123_v16 = vpop.f32.mrf.mxu0 }
  0x9c   :  { %136 = vst.msk [vmem:[#allocation10] sm:$0xff] %vm135_vm1, %v123_v16  ;;  %v164_v17 = vpop.f32.mrf.mxu1 }
  0x9d   :  { %174 = vst.msk [vmem:[#allocation11 + $0x8] sm:$0xff] %vm135_vm1, %v164_v17 }
  0x9f   :  { %v126_v18 = vpop.f32.mrf.mxu3 }
  0xa0   :  { %v201_v19 = vpop.f32.mrf.mxu2  ;;  %137 = vst.msk [vmem:[#allocation10 + $0x8] sm:$0xff] %vm135_vm1, %v126_v18 }
  0xa1   :  { %211 = vst.msk [vmem:[#allocation13 + $0x8] sm:$0xff] %vm135_vm1, %v201_v19 }
  0xa3   :  { %v161_v20 = vpop.f32.mrf.mxu0 }
  0xa4   :  { %173 = vst.msk [vmem:[#allocation11] sm:$0xff] %vm135_vm1, %v161_v20  ;;  %v167_v21 = vpop.f32.mrf.mxu1 }
  0xa5   :  { %175 = vst.msk [vmem:[#allocation11 + $0x10] sm:$0xff] %vm135_vm1, %v167_v21 }
  0xa7   :  { %v129_v22 = vpop.f32.mrf.mxu3 }
  0xa8   :  { %v204_v23 = vpop.f32.mrf.mxu2  ;;  %138 = vst.msk [vmem:[#allocation10 + $0x10] sm:$0xff] %vm135_vm1, %v129_v22 }
  0xa9   :  { %212 = vst.msk [vmem:[#allocation13 + $0x10] sm:$0xff] %vm135_vm1, %v204_v23 }
  0xab   :  { %v198_v24 = vpop.f32.mrf.mxu0 }
  0xac   :  { %210 = vst.msk [vmem:[#allocation13] sm:$0xff] %vm135_vm1, %v198_v24  ;;  %v170_v25 = vpop.f32.mrf.mxu1 }
  0xad   :  { %176 = vst.msk [vmem:[#allocation11 + $0x18] sm:$0xff] %vm135_vm1, %v170_v25 }
  0xae   :  { %239 = dma.vmem_to_hbm [thread:$0]  %s232_s16, 512, %s234_s19, [#allocation12], %s482_s29, %s482_s29, %s483_s30  }
  0xaf   :  { %v132_v26 = vpop.f32.mrf.mxu3 }
  0xb0   :  { %v207_v27 = vpop.f32.mrf.mxu2  ;;  %139 = vst.msk [vmem:[#allocation10 + $0x18] sm:$0xff] %vm135_vm1, %v132_v26 }
  0xb1   :  { %213 = vst.msk [vmem:[#allocation13 + $0x18] sm:$0xff] %vm135_vm1, %v207_v27  ;;  %226 = dma.vmem_to_hbm [thread:$0]  %s219_s21, 512, %s221_s24, [#allocation4], %s482_s29, %s482_s29, %s483_s30  }
  0xb2   :  { %252 = dma.vmem_to_hbm [thread:$0]  %s245_s26, 512, %s247_s7, [#allocation12], %s482_s29, %s482_s29, %s483_s30  }
  0xb3   :  { %477 = dma.done.wait [#allocation4], 512  }
  0xb4   :  { %478 = vsyncadd [#allocation4], 4294966784 }
  0xb5   :  { %479 = dma.done.wait [#allocation12], 1024  }
  0xb6   :  { %480 = vsyncadd [#allocation12], 4294966272 }
  0xb7   :  { %265 = vsyncpa [#allocation3], 1 }
  0xb8   :  { %266 = vsyncpa [#allocation6], 1 }
  0xb9   :  { %267 = vsyncpa [#allocation9], 1 }
  0xba   :  { %268 = vsyncpa [#allocation4], 1 }
  0xbb   :  { %269 = vsyncpa [#allocation12], 1 }

</bundles_post_ra>
